<compile_context>
chip_gen: v6e
topology: v6e:2x2x1
jax: 0.10.0
libtpu: 0.0.40
codegen_flags: <defaults>
</compile_context>

<pallas_src>
import jax
import jax.numpy as jnp
from jax.experimental import pallas as pl
from jax.experimental.pallas import tpu as pltpu


_LANES = 128
_MAX_TILE_ROWS = 2048      # (2048, 128) f32 tile = 1 MiB; 2 streams x 3 bufs = 6 MiB
_STREAM_BUFFERS = 3        # deeper pipelining to cover the long step-0 InfoNCE compute
_INFONCE_CHUNK = 512       # rows of the cosine matrix processed per chunk


def _round_up(x: int, m: int) -> int:
    return ((x + m - 1) // m) * m


def _cdiv(a: int, b: int) -> int:
    return (a + b - 1) // b


def _make_kernel(temperature: float, cont_loss_weight: float, inv_count: float,
                 infonce_chunk: int, matmul_in_bf16: bool):
    inv_temp = 1.0 / float(temperature)
    weight = float(cont_loss_weight)
    inv_count = float(inv_count)

    def kernel(cont_hbm, rec_ref, tgt_ref, loss_ref, rloss_ref, closs_ref,
               cont_vmem, acc_ref):
        step = pl.program_id(0)
        last = pl.num_programs(0) - 1

        # ---------------- contrastive loss (InfoNCE), computed once ----------------
        # Runs on grid step 0 only; overlaps with the DMA of later MSE tiles.
        @pl.when(step == 0)
        def _():
            acc_ref[...] = jnp.zeros_like(acc_ref)

            # cont arrives as a raw HBM ref: copy it once into VMEM (single buffer).
            pltpu.sync_copy(cont_hbm, cont_vmem)

            x = cont_vmem[...].astype(jnp.float32)            # (N, D), N = 2 * batch
            n, _ = x.shape
            h = n // 2

            # Normalize first: O(N*D) work; rsqrt runs on the otherwise-idle EUP.
            sq = jnp.sum(x * x, axis=-1, keepdims=True)       # (N, 1)
            inv_norm = jax.lax.rsqrt(jnp.maximum(sq, jnp.float32(1e-16)))
            x_n = x * inv_norm                                # unit-norm rows

            # Optional bf16 feed for the MXU (off by default to stay within 1e-4 of
            # the f32 reference at small D).
            x_mm = x_n.astype(jnp.bfloat16) if matmul_in_bf16 else x_n

            # Row-chunked masked logsumexp of the cosine-similarity matrix; only a
            # (chunk, N) slab of intermediates is live at any time (VMEM discipline,
            # especially on v7x's 64 MiB VMEM).
            col_ids = jax.lax.broadcasted_iota(jnp.int32, (1, n), 1)
            chunk = min(n, int(infonce_chunk))
            lse_sum = jnp.float32(0.0)
            for r0 in range(0, n, chunk):
                r1 = min(n, r0 + chunk)
                cos_c = jax.lax.dot_general(
                    x_mm[r0:r1, :], x_mm,
                    dimension_numbers=(((1,), (1,)), ((), ())),
                    preferred_element_type=jnp.float32)       # (r1-r0, N)
                row_ids = (jax.lax.broadcasted_iota(jnp.int32, (r1 - r0, 1), 0)
                           + jnp.int32(r0))
                logits = jnp.where(row_ids == col_ids, jnp.float32(-jnp.inf), cos_c)
                logits = logits * jnp.float32(inv_temp)
                m = jnp.max(logits, axis=-1, keepdims=True)
                lse = jnp.log(jnp.sum(jnp.exp(logits - m), axis=-1, keepdims=True)) + m
                lse_sum = lse_sum + jnp.sum(lse)

            # Positive pair for row i is row (i + N/2) mod N.  The mean over the N
            # positive logits equals the mean over the first N/2 pairs, so an O(N*D)
            # half-batch product replaces NxN mask/select work.
            pos_mean = (jnp.sum(x_n[:h, :] * x_n[h:, :]) / jnp.float32(h)) \
                * jnp.float32(inv_temp)

            closs_ref[0, 0] = lse_sum / jnp.float32(n) - pos_mean

        # ------------- reconstruction loss: streamed sum of squares -----------------
        # Accumulate into an (8, 128) vector: pure VPU adds, no cross-lane reduce and
        # no SMEM round-trip in the hot loop.
        diff = rec_ref[...].astype(jnp.float32) - tgt_ref[...].astype(jnp.float32)
        acc_ref[...] += jnp.sum((diff * diff).reshape(-1, 8, _LANES), axis=0)

        @pl.when(step == last)
        def _():
            rec_loss = jnp.sum(acc_ref[...]) * jnp.float32(inv_count)  # TRUE count
            cont_loss = closs_ref[0, 0]
            rloss_ref[0, 0] = rec_loss
            loss_ref[0, 0] = rec_loss + jnp.float32(weight) * cont_loss

    return kernel


def _stream_spec(tile_r: int, buffers):
    idx = lambda i: (i, 0)
    if buffers is not None and buffers > 2 and hasattr(pl, "Buffered"):
        try:
            return pl.BlockSpec((tile_r, _LANES), idx,
                                pipeline_mode=pl.Buffered(buffers))
        except TypeError:
            pass  # older Pallas without pipeline_mode: default double-buffering
    return pl.BlockSpec((tile_r, _LANES), idx)


def cont_rec_loss(cont, rec, target, mask=None, *,
                  temperature: float = 0.1, cont_loss_weight: float = 1.0,
                  max_tile_rows: int = _MAX_TILE_ROWS,
                  infonce_chunk: int = _INFONCE_CHUNK,
                  matmul_in_bf16: bool = False):
    """JAX/Pallas equivalent of ContRecLoss().forward(cont, rec, target, mask)."""
    assert cont.ndim == 2 and cont.shape[0] % 2 == 0, \
        "cont must be (2 * batch, feature_dim)"
    # Default rec_loss is plain nn.MSELoss (not MaskedLoss) -> mask is unused.
    # TODO(synk): support a MaskedLoss-configured rec_loss (multiply rec/target by mask).
    del mask

    n, d = cont.shape

    # Flatten rec/target into a lane-dense (rows, 128) slab.  Choose the tile count
    # first, then the smallest multiple-of-8 row tile that covers the data, so padding
    # waste is bounded to <8 rows per tile (zeros contribute 0 to the squared error).
    rec_f = rec.reshape(-1)
    tgt_f = target.reshape(-1)
    count = rec_f.shape[0]

    rows = _cdiv(count, _LANES)
    num_tiles = max(1, _cdiv(rows, int(max_tile_rows)))
    tile_r = _round_up(_cdiv(rows, num_tiles), 8)
    padded_rows = tile_r * num_tiles
    padded = padded_rows * _LANES
    if padded != count:
        rec_f = jnp.pad(rec_f, (0, padded - count))
        tgt_f = jnp.pad(tgt_f, (0, padded - count))
    rec2d = rec_f.reshape(padded_rows, _LANES)
    tgt2d = tgt_f.reshape(padded_rows, _LANES)

    buffers = min(_STREAM_BUFFERS, num_tiles) if num_tiles > 2 else None
    eff_buffers = buffers if buffers is not None else 2

    kernel = _make_kernel(temperature, cont_loss_weight, 1.0 / count,
                          infonce_chunk, matmul_in_bf16)

    scalar = jax.ShapeDtypeStruct((1, 1), jnp.float32)
    smem_out = pl.BlockSpec(memory_space=pltpu.SMEM)

    rec_itemsize = jnp.dtype(rec.dtype).itemsize
    cont_itemsize = jnp.dtype(cont.dtype).itemsize

    # VMEM budget derived from the actual buffers (clamped to be safe on all gens).
    tile_bytes = tile_r * _LANES * 4
    chunk = min(n, int(infonce_chunk))
    need = (2 * eff_buffers * tile_bytes           # streamed rec/target buffers
            + n * d * cont_itemsize                # resident cont copy (scratch)
            + 8 * _LANES * 4                       # vector accumulator
            + 4 * chunk * n * 4 + 3 * n * d * 4)   # InfoNCE chunk intermediates
    vmem_limit = int(min(max(2 * need + (4 << 20), 16 << 20), 64 << 20))

    cost = pl.CostEstimate(
        flops=int(2 * n * n * d + 8 * n * d + 3 * padded),
        transcendentals=int(n * n + 2 * n),
        bytes_accessed=int(2 * padded * rec_itemsize + n * d * cont_itemsize + 12),
    )

    loss, rec_loss, cont_l = pl.pallas_call(
        kernel,
        out_shape=(scalar, scalar, scalar),
        grid_spec=pltpu.PrefetchScalarGridSpec(
            num_scalar_prefetch=0,
            grid=(num_tiles,),
            in_specs=[
                # cont: raw HBM ref, copied once into a VMEM scratch at step 0
                # (no double-buffered resident input -> half the VMEM on v7x).
                pl.BlockSpec(memory_space=pl.ANY),
                # Streamed, pipelined MSE tiles.
                _stream_spec(tile_r, buffers),
                _stream_spec(tile_r, buffers),
            ],
            out_specs=(smem_out, smem_out, smem_out),
            scratch_shapes=[
                pltpu.VMEM((n, d), cont.dtype),        # resident cont copy
                pltpu.VMEM((8, _LANES), jnp.float32),  # vector sum-of-squares acc
            ],
        ),
        compiler_params=pltpu.CompilerParams(
            dimension_semantics=("arbitrary",),        # reduction axis
            vmem_limit_bytes=vmem_limit,
        ),
        cost_estimate=cost,
    )(cont, rec2d, tgt2d)

    return {
        "loss": loss[0, 0],
        "rec_loss": rec_loss[0, 0],
        "cont_loss": cont_l[0, 0],
    }


def _reference(cont, rec, target, temperature=0.1, cont_loss_weight=1.0):
    """Pure-JAX reference mirroring the PyTorch module (for a sanity check)."""
    rec_loss = jnp.mean((rec - target) ** 2)
    x = cont
    n = x.shape[0]
    norms = jnp.sqrt(jnp.sum(x * x, axis=-1, keepdims=True))
    cos = (x @ x.T) / jnp.maximum(norms * norms.T, 1e-8)
    eye = jnp.eye(n, dtype=bool)
    cos = jnp.where(eye, -jnp.inf, cos) / temperature
    pos_idx = (jnp.arange(n) + n // 2) % n
    pos = cos[jnp.arange(n), pos_idx]
    lse = jax.scipy.special.logsumexp(cos, axis=-1)
    cont_loss = jnp.mean(-pos + lse)
    loss = rec_loss + cont_loss_weight * cont_loss
    return {"loss": loss, "rec_loss": rec_loss, "cont_loss": cont_loss}


def _check(cont, rec, target, mask, **kwargs):
    out = cont_rec_loss(cont, rec, target, mask,
                        temperature=0.1, cont_loss_weight=1.0, **kwargs)
    jax.block_until_ready(out)
    ref = _reference(cont, rec, target)
    for name in ("loss", "rec_loss", "cont_loss"):
        assert jnp.allclose(out[name], ref[name], rtol=1e-4, atol=1e-4), (
            name, out[name], ref[name])


if __name__ == "__main__":
    key = jax.random.PRNGKey(0)
    keys = jax.random.split(key, 10)

    # Check 1: baseline small shapes.
    batch = 4          # -> cont has 2*batch = 8 rows
    feat = 32
    rec_shape = (2, 4, 16, 16)   # 2048 elements -> (16, 128) lane-dense slab
    cont = jax.random.normal(keys[0], (2 * batch, feat), dtype=jnp.float32)
    rec = jax.random.normal(keys[1], rec_shape, dtype=jnp.float32)
    target = jax.random.normal(keys[2], rec_shape, dtype=jnp.float32)
    mask = (jax.random.uniform(keys[3], rec_shape) > 0.5).astype(jnp.float32)
    _check(cont, rec, target, mask)

    # Check 2: element count NOT a multiple of 128 -> exercises zero-padding and
    # division by the true element count.
    rec_shape2 = (2, 3, 7, 5)    # 210 elements
    rec2 = jax.random.normal(keys[4], rec_shape2, dtype=jnp.float32)
    target2 = jax.random.normal(keys[5], rec_shape2, dtype=jnp.float32)
    _check(cont, rec2, target2, None)

    # Check 3: multi-tile streaming (small max_tile_rows forces 3 grid steps ->
    # Buffered(3) pipelining + ragged padding + vector accumulator across steps),
    # and a chunked InfoNCE (2 chunks).
    batch3, feat3 = 16, 64
    rec_shape3 = (2, 5, 70, 100)  # 70000 elements -> 547 lane-rows -> 3 tiles of 184
    cont3 = jax.random.normal(keys[6], (2 * batch3, feat3), dtype=jnp.float32)
    rec3 = jax.random.normal(keys[7], rec_shape3, dtype=jnp.float32)
    target3 = jax.random.normal(keys[8], rec_shape3, dtype=jnp.float32)
    _check(cont3, rec3, target3, None, max_tile_rows=256, infonce_chunk=16)

    print("KERNEL_OK")
</pallas_src>

<mosaic_0001>
module attributes {stable_mosaic.version = 11 : i64} {
  func.func @kernel(%arg0: i32, %arg1: memref<8x32xf32, #tpu.memory_space<any>>, %arg2: memref<16x128xf32, #tpu.memory_space<vmem>>, %arg3: memref<16x128xf32, #tpu.memory_space<vmem>>, %arg4: memref<1x1xf32, #tpu.memory_space<smem>>, %arg5: memref<1x1xf32, #tpu.memory_space<smem>>, %arg6: memref<1x1xf32, #tpu.memory_space<smem>>, %arg7: memref<8x32xf32, #tpu.memory_space<vmem>>, %arg8: memref<8x128xf32, #tpu.memory_space<vmem>>) attributes {dimension_semantics = [#tpu.dimension_semantics<arbitrary>], iteration_bounds = array<i64: 1>, scalar_prefetch = 0 : i64, scratch_operands = 2 : i64, tpu.core_type = #tpu.core_type<tc>, window_params = [{}, {transform_indices = @transform_1, window_bounds = array<i64: 16, 128>}, {transform_indices = @transform_2, window_bounds = array<i64: 16, 128>}, {transform_indices = @transform_3, window_bounds = array<i64: 1, 1>}, {transform_indices = @transform_4, window_bounds = array<i64: 1, 1>}, {transform_indices = @transform_5, window_bounds = array<i64: 1, 1>}]} {
    %c0_i32 = arith.constant 0 : i32
    %0 = arith.cmpi eq, %arg0, %c0_i32 : i32
    %1 = arith.extui %0 : i1 to i32
    %c0_i32_0 = arith.constant 0 : i32
    %2 = arith.cmpi ne, %1, %c0_i32_0 : i32
    scf.if %2 {
      %cst_10 = arith.constant 0.000000e+00 : f32
      %15 = vector.broadcast %cst_10 : f32 to vector<8x128xf32>
      %c0_11 = arith.constant 0 : index
      %c0_12 = arith.constant 0 : index
      %16 = vector.load %arg8[%c0_11, %c0_12] : memref<8x128xf32, #tpu.memory_space<vmem>>, vector<8x128xf32>
      tpu.vector_store %arg8[%c0_11, %c0_12], %15 {strides = array<i32>} : memref<8x128xf32, #tpu.memory_space<vmem>>, vector<8x128xf32>,
      "tpu.region"() ({
        %64 = tpu.sem_alloc : memref<!tpu.dma_semaphore, #tpu.memory_space<semaphore_mem>>
        tpu.enqueue_dma source(%arg1 : memref<8x32xf32, #tpu.memory_space<any>>) target(%arg7 : memref<8x32xf32, #tpu.memory_space<vmem>>) target_semaphore(%64 : memref<!tpu.dma_semaphore, #tpu.memory_space<semaphore_mem>>)
        tpu.wait_dma2 semaphore(%64 : memref<!tpu.dma_semaphore, #tpu.memory_space<semaphore_mem>>) src(%arg1 : memref<8x32xf32, #tpu.memory_space<any>>) dst(%arg7 : memref<8x32xf32, #tpu.memory_space<vmem>>)
        tpu.yield
      }) : () -> ()
      %c0_13 = arith.constant 0 : index
      %c0_14 = arith.constant 0 : index
      %17 = vector.load %arg7[%c0_13, %c0_14] : memref<8x32xf32, #tpu.memory_space<vmem>>, vector<8x32xf32>
      %18 = arith.mulf %17, %17 : vector<8x32xf32>
      %cst_15 = arith.constant dense<0.000000e+00> : vector<8xf32>
      %19 = vector.multi_reduction <add>, %18, %cst_15 [1] : vector<8x32xf32> to vector<8xf32>
      %20 = vector.shape_cast %19 : vector<8xf32> to vector<8x1xf32>
      %cst_16 = arith.constant 1.000000e-16 : f32
      %21 = vector.broadcast %cst_16 : f32 to vector<8x1xf32>
      %22 = arith.maximumf %20, %21 : vector<8x1xf32>
      %23 = math.rsqrt %22 : vector<8x1xf32>
      %24 = vector.broadcast %23 : vector<8x1xf32> to vector<8x32xf32>
      %25 = arith.mulf %17, %24 : vector<8x32xf32>
      %26 = tpu.iota {dimensions = array<i32: 1>} : vector<1x8xi32>
      %cst_17 = arith.constant dense<0.000000e+00> : vector<8x8xf32>
      %27 = tpu.matmul %25, %25, %cst_17 {dimension_numbers = #tpu.dot_dimension_numbers<[1], [1], [0], [0], [0, 0, 1, 0], [], []>} : vector<8x32xf32>, vector<8x32xf32>, vector<8x8xf32> -> vector<8x8xf32>
      %28 = tpu.iota {dimensions = array<i32: 0>} : vector<8x1xi32>
      %c0_i32_18 = arith.constant 0 : i32
      %29 = vector.broadcast %c0_i32_18 : i32 to vector<8x1xi32>
      %30 = arith.addi %28, %29 : vector<8x1xi32>
      %31 = vector.broadcast %30 : vector<8x1xi32> to vector<8x8xi32>
      %32 = vector.broadcast %26 : vector<1x8xi32> to vector<8x8xi32>
      %33 = arith.cmpi eq, %31, %32 : vector<8x8xi32>
      %cst_19 = arith.constant 0xFF800000 : f32
      %34 = vector.broadcast %cst_19 : f32 to vector<8x8xf32>
      %35 = arith.select %33, %34, %27 : vector<8x8xi1>, vector<8x8xf32>
      %cst_20 = arith.constant 1.000000e+01 : f32
      %36 = vector.broadcast %cst_20 : f32 to vector<8x8xf32>
      %37 = arith.mulf %35, %36 : vector<8x8xf32>
      %cst_21 = arith.constant dense<0xFF800000> : vector<8xf32>
      %38 = vector.multi_reduction <maximumf>, %37, %cst_21 [1] : vector<8x8xf32> to vector<8xf32>
      %39 = vector.shape_cast %38 : vector<8xf32> to vector<8x1xf32>
      %40 = vector.broadcast %39 : vector<8x1xf32> to vector<8x8xf32>
      %41 = arith.subf %37, %40 : vector<8x8xf32>
      %42 = math.exp %41 : vector<8x8xf32>
      %cst_22 = arith.constant dense<0.000000e+00> : vector<8xf32>
      %43 = vector.multi_reduction <add>, %42, %cst_22 [1] : vector<8x8xf32> to vector<8xf32>
      %44 = vector.shape_cast %43 : vector<8xf32> to vector<8x1xf32>
      %45 = math.log %44 : vector<8x1xf32>
      %46 = arith.addf %45, %39 : vector<8x1xf32>
      %47 = vector.shape_cast %46 : vector<8x1xf32> to vector<1x8x1xf32>
      %cst_23 = arith.constant dense<0.000000e+00> : vector<1xf32>
      %48 = vector.multi_reduction <add>, %47, %cst_23 [1, 2] : vector<1x8x1xf32> to vector<1xf32>
      %49 = vector.shape_cast %48 : vector<1xf32> to vector<1x1x1xf32>
      %50 = vector.extract %49[0, 0, 0] : f32 from vector<1x1x1xf32>
      %cst_24 = arith.constant 0.000000e+00 : f32
      %51 = arith.addf %cst_24, %50 : f32
      %52 = vector.extract_strided_slice %25 {offsets = [0, 0], sizes = [4, 32], strides = [1, 1]} : vector<8x32xf32> to vector<4x32xf32>
      %53 = vector.extract_strided_slice %25 {offsets = [4, 0], sizes = [4, 32], strides = [1, 1]} : vector<8x32xf32> to vector<4x32xf32>
      %54 = arith.mulf %52, %53 : vector<4x32xf32>
      %55 = vector.shape_cast %54 : vector<4x32xf32> to vector<1x4x32xf32>
      %cst_25 = arith.constant dense<0.000000e+00> : vector<1xf32>
      %56 = vector.multi_reduction <add>, %55, %cst_25 [1, 2] : vector<1x4x32xf32> to vector<1xf32>
      %57 = vector.shape_cast %56 : vector<1xf32> to vector<1x1x1xf32>
      %58 = vector.extract %57[0, 0, 0] : f32 from vector<1x1x1xf32>
      %cst_26 = arith.constant 4.000000e+00 : f32
      %59 = arith.divf %58, %cst_26 : f32
      %cst_27 = arith.constant 1.000000e+01 : f32
      %60 = arith.mulf %59, %cst_27 : f32
      %cst_28 = arith.constant 8.000000e+00 : f32
      %61 = arith.divf %51, %cst_28 : f32
      %62 = arith.subf %61, %60 : f32
      %c0_29 = arith.constant 0 : index
      %c0_30 = arith.constant 0 : index
      %63 = memref.load %arg6[%c0_29, %c0_30] : memref<1x1xf32, #tpu.memory_space<smem>>
      memref.store %62, %arg6[%c0_29, %c0_30] : memref<1x1xf32, #tpu.memory_space<smem>>
    } else {
    }
    %c0 = arith.constant 0 : index
    %c0_1 = arith.constant 0 : index
    %3 = vector.load %arg2[%c0, %c0_1] : memref<16x128xf32, #tpu.memory_space<vmem>>, vector<16x128xf32>
    %c0_2 = arith.constant 0 : index
    %c0_3 = arith.constant 0 : index
    %4 = vector.load %arg3[%c0_2, %c0_3] : memref<16x128xf32, #tpu.memory_space<vmem>>, vector<16x128xf32>
    %5 = arith.subf %3, %4 : vector<16x128xf32>
    %c0_4 = arith.constant 0 : index
    %c0_5 = arith.constant 0 : index
    %6 = vector.load %arg8[%c0_4, %c0_5] : memref<8x128xf32, #tpu.memory_space<vmem>>, vector<8x128xf32>
    %7 = arith.mulf %5, %5 : vector<16x128xf32>
    %8 = vector.shape_cast %7 : vector<16x128xf32> to vector<2x8x128xf32>
    %cst = arith.constant dense<0.000000e+00> : vector<8x128xf32>
    %9 = vector.multi_reduction <add>, %8, %cst [0] : vector<2x8x128xf32> to vector<8x128xf32>
    %10 = arith.addf %6, %9 : vector<8x128xf32>
    %c0_6 = arith.constant 0 : index
    %c0_7 = arith.constant 0 : index
    %11 = vector.load %arg8[%c0_6, %c0_7] : memref<8x128xf32, #tpu.memory_space<vmem>>, vector<8x128xf32>
    tpu.vector_store %arg8[%c0_6, %c0_7], %10 {strides = array<i32>} : memref<8x128xf32, #tpu.memory_space<vmem>>, vector<8x128xf32>,
    %c0_i32_8 = arith.constant 0 : i32
    %12 = arith.cmpi eq, %arg0, %c0_i32_8 : i32
    %13 = arith.extui %12 : i1 to i32
    %c0_i32_9 = arith.constant 0 : i32
    %14 = arith.cmpi ne, %13, %c0_i32_9 : i32
    scf.if %14 {
      %c0_10 = arith.constant 0 : index
      %c0_11 = arith.constant 0 : index
      %15 = vector.load %arg8[%c0_10, %c0_11] : memref<8x128xf32, #tpu.memory_space<vmem>>, vector<8x128xf32>
      %16 = vector.shape_cast %15 : vector<8x128xf32> to vector<1x8x128xf32>
      %cst_12 = arith.constant dense<0.000000e+00> : vector<1xf32>
      %17 = vector.multi_reduction <add>, %16, %cst_12 [1, 2] : vector<1x8x128xf32> to vector<1xf32>
      %18 = vector.shape_cast %17 : vector<1xf32> to vector<1x1x1xf32>
      %19 = vector.extract %18[0, 0, 0] : f32 from vector<1x1x1xf32>
      %cst_13 = arith.constant 4.8828125E-4 : f32
      %20 = arith.mulf %19, %cst_13 : f32
      %c0_14 = arith.constant 0 : index
      %c0_15 = arith.constant 0 : index
      %21 = memref.load %arg6[%c0_14, %c0_15] : memref<1x1xf32, #tpu.memory_space<smem>>
      %c0_16 = arith.constant 0 : index
      %c0_17 = arith.constant 0 : index
      %22 = memref.load %arg5[%c0_16, %c0_17] : memref<1x1xf32, #tpu.memory_space<smem>>
      memref.store %20, %arg5[%c0_16, %c0_17] : memref<1x1xf32, #tpu.memory_space<smem>>
      %cst_18 = arith.constant 1.000000e+00 : f32
      %23 = arith.mulf %cst_18, %21 : f32
      %24 = arith.addf %20, %23 : f32
      %c0_19 = arith.constant 0 : index
      %c0_20 = arith.constant 0 : index
      %25 = memref.load %arg4[%c0_19, %c0_20] : memref<1x1xf32, #tpu.memory_space<smem>>
      memref.store %24, %arg4[%c0_19, %c0_20] : memref<1x1xf32, #tpu.memory_space<smem>>
    } else {
    }
    return
  }
  func.func @transform_1(%arg0: i32) -> (i32, i32) {
    %c0_i32 = arith.constant 0 : i32
    %c0_i32_0 = arith.constant 0 : i32
    return %arg0, %c0_i32 : i32, i32
  }
  func.func @transform_2(%arg0: i32) -> (i32, i32) {
    %c0_i32 = arith.constant 0 : i32
    %c0_i32_0 = arith.constant 0 : i32
    return %arg0, %c0_i32 : i32, i32
  }
  func.func @transform_3(%arg0: i32) -> (i32, i32) {
    %c0_i32 = arith.constant 0 : i32
    %c0_i32_0 = arith.constant 0 : i32
    %c0_i32_1 = arith.constant 0 : i32
    return %c0_i32, %c0_i32_0 : i32, i32
  }
  func.func @transform_4(%arg0: i32) -> (i32, i32) {
    %c0_i32 = arith.constant 0 : i32
    %c0_i32_0 = arith.constant 0 : i32
    %c0_i32_1 = arith.constant 0 : i32
    return %c0_i32, %c0_i32_0 : i32, i32
  }
  func.func @transform_5(%arg0: i32) -> (i32, i32) {
    %c0_i32 = arith.constant 0 : i32
    %c0_i32_0 = arith.constant 0 : i32
    %c0_i32_1 = arith.constant 0 : i32
    return %c0_i32, %c0_i32_0 : i32, i32
  }
}

</mosaic_0001>

<bundles_post_ra>
// kernel: tpu_custom_call.1
= control target key start
LH: loop header
LB: loop body
LE: loop exit
PB: predicated region body
PF: predicated region fallthrough
CT: control target
= control target key end

     0   :  { %11 = vsyncpa [#allocation5], 0  ;;  %s455_s0 = inlined_call_operand.hbm [shape: f32[8,32], index: 0, kind: input, shape index: {}]   ;;  %s456_s1 = inlined_call_operand.hbm [shape: f32[16,128], index: 1, kind: input, shape index: {}]   ;;  %s457_s2 = inlined_call_operand.hbm [shape: f32[16,128], index: 2, kind: input, shape index: {}]   ;;  %s458_s3 = inlined_call_operand.hbm [shape: f32[1,1], index: 3, kind: output, shape index: {0}]   ;;  %s459_s4 = inlined_call_operand.hbm [shape: f32[1,1], index: 4, kind: output, shape index: {1}]   ;;  %s460_s5 = inlined_call_operand.hbm [shape: f32[1,1], index: 5, kind: output, shape index: {2}]  }
   0x1   :  { %12 = vsyncpa [#allocation8], 0 }
   0x2   :  { %13 = vsyncpa [#allocation6], 0 }
   0x3   :  { %14 = vsyncpa [#allocation11], 0  ;;  %s397_s18 = smov [#allocation4]  }
   0x4   :  { %s20_s19 = sshll.u32 %s397_s18, 4  ;;  %s21_s19 = int_to_ptr.vmem [resolvable:$true] %s20_s19 }
   0x5   :  { %s311_s20 = scalar_lea.vmem %s21_s19, 256  ;;  %p316_p1 = scmp.lt.s32.totalorder %s21_s19, %s21_s19 }
   0x6   :  { %p312_p0 = scmp.ne.s32.totalorder %s21_s19, %s311_s20  ;;  %p317_p2 = scmp.lt.s32.totalorder %s311_s20, %s311_s20 }
   0x8   :  { %p318_p3 = por %p317_p2, %p316_p1 }
   0xa   :  { %p319_p4 = pnand %p318_p3, %p312_p0 }
   0xc   :  { %322 = shalt.err (!%p319_p4)
}
   0xd   :  { %s398_s21 = smov 128   ;;  %s399_s22 = smov 8  }
   0xe   :  { %26 = dma.hbm_to_vmem [thread:$0]  %s456_s1, 256, %s21_s19, [#allocation5], %s398_s21, %s398_s21, %s399_s22  }
   0xf   :  { %s400_s25 = smov [#allocation7]  }
  0x10   :  { %s32_s26 = sshll.u32 %s400_s25, 4  ;;  %s33_s26 = int_to_ptr.vmem [resolvable:$true] %s32_s26 }
  0x11   :  { %s331_s27 = scalar_lea.vmem %s33_s26, 256  ;;  %p336_p6 = scmp.lt.s32.totalorder %s33_s26, %s33_s26 }
  0x12   :  { %p332_p5 = scmp.ne.s32.totalorder %s33_s26, %s331_s27  ;;  %p337_p7 = scmp.lt.s32.totalorder %s331_s27, %s331_s27 }
  0x14   :  { %p338_p8 = por %p337_p7, %p336_p6 }
  0x16   :  { %p339_p9 = pnand %p338_p8, %p332_p5 }
  0x18   :  { %342 = shalt.err (!%p339_p9)
}
  0x19   :  { %38 = dma.hbm_to_vmem [thread:$0]  %s457_s2, 256, %s33_s26, [#allocation8], %s398_s21, %s398_s21, %s399_s22  }
  0x1a   :  { %387 = dma.done.wait [#allocation5], 256  }
  0x1b   :  { %388 = vsyncadd [#allocation5], 4294967040 }
  0x1c   :  { %389 = dma.done.wait [#allocation8], 256  }
  0x1d   :  { %390 = vsyncadd [#allocation8], 4294967040 }
  0x1e   :  { %s401_s30 = smov [#allocation2]  }
  0x1f   :  { %s57_s1 = sshll.u32 %s401_s30, 4  ;;  %s58_s1 = int_to_ptr.vmem [resolvable:$true] %s57_s1 }
  0x20   :  { %s351_s6 = scalar_lea.vmem %s58_s1, 128  ;;  %p356_p11 = scmp.lt.s32.totalorder %s58_s1, %s58_s1 }
  0x21   :  { %p352_p10 = scmp.ne.s32.totalorder %s58_s1, %s351_s6  ;;  %p357_p12 = scmp.lt.s32.totalorder %s351_s6, %s351_s6 }
  0x23   :  { %p358_p13 = por %p357_p12, %p356_p11 }
  0x25   :  { %p359_p0 = pnand %p358_p13, %p352_p10 }
  0x27   :  { %362 = shalt.err (!%p359_p0)  }
  0x28   :  { %60 = dma.hbm_to_vmem [thread:$0]  %s455_s0, 128, %s58_s1, [#allocation13] }
  0x29   :  { %391 = dma.done.wait [#allocation13], 128 }
  0x2a   :  { %392 = vsyncadd [#allocation13], 4294967168  ;;  %v64_v0 = vld [vmem:[#allocation2] sm:$0xff]  ;;  %vm66_vm0 = vcmask 261120   ;;  %v402_v3 = vmov 0.0   ;;  %vm403_vm1 = vmmov 0   ;;  %v73_v8 = vlaneseq }
  0x2b   :  { %v65_v1 = vmul.f32 %v64_v0, %v64_v0  ;;  %276 = vmatprep.subr.mxu0 %v402_v3  ;;  %278 = vmatprep.mubr.msk.f32.mxu0 %vm403_vm1, %v402_v3  ;;  %vm153_vm3 = vcmask 64512   ;;  %vm181_vm4 = vcmask 257024   ;;  %v202_v25 = vld [vmem:[#allocation4] sm:$0xff]  ;;  %v203_v26 = vld [vmem:[#allocation4 + $0x8] sm:$0xff]  ;;  %v204_v27 = vld [vmem:[#allocation7] sm:$0xff]  ;;  %vm166_vm5 = vcmask 7168  }
  0x2c   :  { %v74_v9 = vand.u32 127, %v73_v8  ;;  %v149_v10 = vshrl.u32 %v73_v8, 7  ;;  %v205_v28 = vld [vmem:[#allocation7 + $0x8] sm:$0xff]  ;;  %v206_v29 = vsub.f32 %v202_v25, %v204_v27  ;;  %s404_s15 = smov [#allocation10]   ;;  %s405_s19 = smov [#allocation12]  }
  0x2d   :  { %v67_v2 = vsel %vm66_vm0, %v65_v1, 0.0  ;;  %v207_v30 = vsub.f32 %v203_v26, %v205_v28  ;;  %s406_s22 = smov [#allocation9]  }
  0x2e   :  { %68 = vadd.xlane.f32.xlu0 %v67_v2  ;;  %vm150_vm2 = vcmp.eq.s32.totalorder %v149_v10, %v74_v9  ;;  %v209_v33 = vmul.f32 %v206_v29, %v206_v29 }
  0x2f   :  { %v210_v34 = vmul.f32 %v207_v30, %v207_v30 }
  0x31   :  { %v211_v37 = vadd.f32 %v210_v34, %v209_v33 }
  0xb7   :  { %v69_v4 = vpop.xlane.xlu0 %68 }
  0xb8   :  { %v70_v5 = vmax.f32 %v69_v4, 1e-16 }
  0xba   :  { %297 = vrsqrt.f32 %v70_v5 }
  0xc7   :  { %v298_v6 = vpop.eup %297 }
  0xc8   :  { %v72_v7 = vmul.f32 %v298_v6, %v64_v0 }
  0xca   :  { %277 = vmatpush3.xpose.msk.msra.mxu0 %vm66_vm0, %v72_v7  ;;  %v178_v12 = vrot.slane %v72_v7, 4 }
  0xcc   :  { %v180_v17 = vmul.f32 %v178_v12, %v72_v7 }
  0xcd   :  { %279 = vmatmul.mubr.msk.f32.vlgmr.msra.gmra.mxu0 %vm66_vm0, %v72_v7 }
  0xce   :  { %v182_v18 = vsel %vm181_vm4, %v180_v17, 0.0 }
 0x18d   :  { %v144_v11 = vpop.f32.mrf.mxu0 }
 0x18e   :  { %v151_v13 = vsel %vm150_vm2, -inf, %v144_v11 }
 0x18f   :  { %v152_v14 = vmul.f32 10.0, %v151_v13  ;;  %v280_v15 = vpop.f32.mrf.mxu0 }
 0x191   :  { %v154_v16 = vsel %vm153_vm3, %v152_v14, -inf }
 0x192   :  { %155 = vmax.xlane.f32.xlu0 %v154_v16 }
 0x196   :  { %183 = vadd.xlane.f32.xlu0 %v182_v18 }
 0x21b   :  { %v156_v19 = vpop.xlane.xlu0 %155 }
 0x21c   :  { %v157_v20 = vsub.f32 %v152_v14, %v156_v19 }
 0x21e   :  { %v158_v21 = vmul.f32 1.442695, %v157_v20 }
 0x21f   :  { %v184_v38 = vpop.xlane.xlu0 %183 }
 0x220   :  { %299 = vpow2.f32 %v158_v21  ;;  %v185_v39 = vrot.slane %v184_v38, 4 }
 0x222   :  { %v186_v40 = vadd.f32 %v185_v39, %v184_v38 }
 0x224   :  { %v187_v41 = vrot.slane %v186_v40, 2 }
 0x226   :  { %v188_v45 = vadd.f32 %v187_v41, %v186_v40 }
 0x228   :  { %v189_v51 = vrot.slane %v188_v45, 1 }
 0x22a   :  { %v190_v56 = vadd.f32 %v189_v51, %v188_v45 }
 0x22d   :  { %v300_v22 = vpop.eup %299 }
 0x22e   :  { %v160_v23 = vsel %vm153_vm3, %v300_v22, 0.0 }
 0x22f   :  { %161 = vadd.xlane.f32.xlu1 %v160_v23 }
 0x2b8   :  { %v162_v24 = vpop.xlane.xlu1 %161 }
 0x2b9   :  { %301 = vlog2.f32 %v162_v24 }
 0x2c6   :  { %v302_v31 = vpop.eup %301 }
 0x2c7   :  { %v164_v32 = vmul.f32 0.6931472, %v302_v31 }
 0x2c9   :  { %v165_v35 = vadd.f32 %v164_v32, %v156_v19 }
 0x2cb   :  { %v167_v36 = vsel %vm166_vm5, %v165_v35, 0.0 }
 0x2cc   :  { %168 = vadd.xlane.f32.xlu1 %v167_v36 }
 0x2d0   :  { %218 = vadd.xlane.f32.xlu1 %v211_v37 }
 0x355   :  { %v169_v42 = vpop.xlane.xlu1 %168 }
 0x356   :  { %v170_v43 = vrot.slane %v169_v42, 4 }
 0x358   :  { %v171_v44 = vadd.f32 %v170_v43, %v169_v42 }
 0x359   :  { %v219_v46 = vpop.xlane.xlu1 %218 }
 0x35a   :  { %v172_v47 = vrot.slane %v171_v44, 2  ;;  %v220_v48 = vrot.slane %v219_v46, 4 }
 0x35c   :  { %v221_v49 = vadd.f32 %v220_v48, %v219_v46  ;;  %v173_v50 = vadd.f32 %v172_v47, %v171_v44 }
 0x35e   :  { %v222_v52 = vrot.slane %v221_v49, 2  ;;  %v174_v53 = vrot.slane %v173_v50, 1 }
 0x360   :  { %v223_v54 = vadd.f32 %v222_v52, %v221_v49  ;;  %v175_v55 = vadd.f32 %v174_v53, %v173_v50 }
 0x362   :  { %281 = vpush %v175_v55  ;;  %v224_v57 = vrot.slane %v223_v54, 1 }
 0x363   :  { %283 = vpush %v190_v56 }
 0x364   :  { %v225_v58 = vadd.f32 %v224_v57, %v223_v54 }
 0x366   :  { %285 = vpush %v225_v58 }
 0x393   :  { %s282_s0 = spop %281 }
 0x394   :  { %s284_s2 = spop %283  ;;  %s198_s10 = smul.f32 0.125, %s282_s0 }
 0x395   :  { %s194_s9 = smul.f32 0.25, %s284_s2 }
 0x397   :  { %s195_s11 = smul.f32 10.0, %s194_s9  ;;  %s286_s12 = spop %285 }
 0x398   :  { %s227_s13 = smul.f32 0.00048828125, %s286_s12 }
 0x399   :  { %s199_s14 = ssub.f32 %s198_s10, %s195_s11 }
 0x39a   :  { %230 = sst [smem:[#allocation10]] %s227_s13 }
 0x39b   :  { %201 = sst [smem:[#allocation12]] %s199_s14 }
 0x39c   :  { %249 = dma.smem_to_hbm %s404_s15, 16, %s459_s4, [#allocation11]  }
 0x39d   :  { %s231_s18 = sadd.f32 %s227_s13, %s199_s14 }
 0x39e   :  { %257 = dma.smem_to_hbm %s405_s19, 16, %s460_s5, [#allocation11]  }
 0x39f   :  { %233 = sst [smem:[#allocation9]] %s231_s18 }
 0x3a0   :  { %241 = dma.smem_to_hbm %s406_s22, 16, %s458_s3, [#allocation6]  }
 0x3a1   :  { %393 = dma.done.wait [#allocation6], 16  }
 0x3a2   :  { %394 = vsyncadd [#allocation6], 4294967280 }
 0x3a3   :  { %395 = dma.done.wait [#allocation11], 32  }
 0x3a4   :  { %396 = vsyncadd [#allocation11], 4294967264 }
 0x3a5   :  { %267 = sfence }
 0x3a6   :  { %268 = vsyncpa [#allocation5], 1 }
 0x3a7   :  { %269 = vsyncpa [#allocation8], 1 }
 0x3a8   :  { %270 = vsyncpa [#allocation6], 1 }
 0x3a9   :  { %271 = vsyncpa [#allocation11], 1 }

</bundles_post_ra>
